<compile_context>
chip_gen: v7x
topology: tpu7x:2x2x1
jax: 0.10.0
libtpu: 0.0.40
codegen_flags: <defaults>
</compile_context>

<pallas_src>
import numpy as np
import jax
import jax.numpy as jnp
from jax.experimental import pallas as pl
from jax.experimental.pallas import tpu as pltpu

_LANE = 128
_SUBLANE = 8
_NEG_SLOPE = 0.01  # torch.nn.LeakyReLU default


def _round_up(n, m):
    return ((n + m - 1) // m) * m


def _build_skip_matrix(in_features, out_features, n_params, n_vars,
                       skipindices, isfirst, islast, noskipping):
    """Static (in_features, out_features) 0/1 matrix so identity = x @ S."""
    S = np.zeros((in_features, out_features), dtype=np.float32)
    if noskipping:
        return S
    if in_features < out_features:
        src = list(skipindices) if isfirst else list(range(len(skipindices)))
        for j, s in enumerate(src):
            S[s, j] = 1.0
    elif out_features < in_features:
        start = n_params if (islast and len(skipindices) > n_vars) else 0
        for j in range(out_features):
            S[start + j, j] = 1.0
    else:
        np.fill_diagonal(S, 1.0)
    return S


def _make_kernel(n_layers, relu_flags, negative_slope,
                 w_offs, k_dims, b_offs, s_off, in_features, out_features):
    a = np.float32(negative_slope)

    def kernel(x_ref, slab_ref, o_ref):
        x = x_ref[...]                                         # (B, in_features)

        # Skip / identity path: one fused MXU matmul against the static S.
        s = slab_ref[pl.ds(s_off, in_features), :]             # (in, lane_w)
        identity = jnp.dot(x, s, preferred_element_type=jnp.float32)

        r = x
        for i in range(n_layers):
            w = slab_ref[pl.ds(w_offs[i], k_dims[i]), :]       # (K_i, lane_w)
            b = slab_ref[pl.ds(b_offs[i], 1), :]               # (1, lane_w)
            r = jnp.dot(r, w, preferred_element_type=jnp.float32) + b
            if relu_flags[i]:
                r = jnp.maximum(r, a * r)                      # leaky relu

        o_ref[...] = (r + identity)[:, :out_features].astype(o_ref.dtype)

    return kernel


def make_linear_with_skip_connection(weights, biases, *, n_params, n_vars,
                                     skipindices, isfirst=False, islast=False,
                                     noskipping=False,
                                     negative_slope=_NEG_SLOPE):
    """One-time prep (== module __init__). Returns a jitted forward: x -> y.

    weights[i] is torch-layout (out_i, in_i); biases[i] is (out_i,).
    Implements the dropout=0 / eval path of the PyTorch module.
    """
    # TODO(synk): nn.Dropout (training-mode RNG dropout) not implemented; the
    # reference module is exercised with dropout=0, which is the path here.
    n_layers = len(weights)
    in_features = int(weights[0].shape[1])
    out_features = int(weights[-1].shape[0])
    dims = [in_features] + [int(w.shape[0]) for w in weights]
    lane_w = _round_up(max(dims[1:]), _LANE)   # every layer-output dim -> lane_w

    # --- slab row layout (all offsets 8-aligned) ---------------------------
    # K of layer 0 is the raw in_features (x stays unpadded); layers > 0
    # consume the lane_w-wide activation, so their K is lane_w (extra rows of
    # W^T are zero, and the corresponding activation columns are exactly zero
    # because weight-pad columns and bias pads are zero and leaky_relu(0)=0).
    k_dims = [in_features] + [lane_w] * (n_layers - 1)
    row = 0
    w_offs = []
    for i in range(n_layers):
        w_offs.append(row)
        row += _round_up(k_dims[i], _SUBLANE)
    s_off = row
    row += _round_up(in_features, _SUBLANE)
    b_offs = []
    for _ in range(n_layers):
        b_offs.append(row)
        row += 1
    total_rows = _round_up(row, _SUBLANE)

    slab = np.zeros((total_rows, lane_w), dtype=np.float32)
    for i, (w, b) in enumerate(zip(weights, biases)):
        wt = np.asarray(w, dtype=np.float32).T            # (dims[i], dims[i+1])
        slab[w_offs[i]:w_offs[i] + dims[i], :dims[i + 1]] = wt
        slab[b_offs[i], :dims[i + 1]] = np.asarray(b, dtype=np.float32)
    S = _build_skip_matrix(in_features, out_features, n_params, n_vars,
                           skipindices, isfirst, islast, noskipping)
    slab[s_off:s_off + in_features, :out_features] = S
    slab = jnp.asarray(slab)                              # uploaded once

    relu_flags = tuple(not (islast and i == n_layers - 1)
                       for i in range(n_layers))
    kernel = _make_kernel(n_layers, relu_flags, negative_slope,
                          tuple(w_offs), tuple(k_dims), tuple(b_offs),
                          s_off, in_features, out_features)

    vmem_spec = pl.BlockSpec(memory_space=pltpu.MemorySpace.VMEM)

    @jax.jit
    def forward(x):
        B = x.shape[0]
        return pl.pallas_call(
            kernel,
            out_shape=jax.ShapeDtypeStruct((B, out_features), x.dtype),
            in_specs=[vmem_spec, vmem_spec],
            out_specs=vmem_spec,
            compiler_params=pltpu.CompilerParams(vmem_limit_bytes=8 << 20),
        )(x, slab)

    return forward


if __name__ == "__main__":
    key = jax.random.PRNGKey(0)

    # Small config consistent with the module (in < out, isfirst gather branch).
    B = 8
    in_features, out_features = 16, 32
    hidden_features = max(in_features, out_features)      # module default -> 32
    nskiplayers = 2
    n_params, n_vars = 4, 6
    skipindices = [0, 2, 4, 6, 8, 10]
    isfirst, islast, noskipping = True, False, False

    k_x, k_w0, k_b0, k_w1, k_b1 = jax.random.split(key, 5)
    x = jax.random.normal(k_x, (B, in_features), dtype=jnp.float32)
    # torch init: normal(mean=0, std=0.001) for weights and biases.
    w0 = 0.001 * jax.random.normal(k_w0, (hidden_features, in_features), jnp.float32)
    b0 = 0.001 * jax.random.normal(k_b0, (hidden_features,), jnp.float32)
    w1 = 0.001 * jax.random.normal(k_w1, (out_features, hidden_features), jnp.float32)
    b1 = 0.001 * jax.random.normal(k_b1, (out_features,), jnp.float32)
    weights, biases = [w0, w1], [b0, b1]

    forward = make_linear_with_skip_connection(
        weights, biases, n_params=n_params, n_vars=n_vars,
        skipindices=skipindices, isfirst=isfirst, islast=islast,
        noskipping=noskipping)

    out = forward(x)
    jax.block_until_ready(out)

    # Pure-JAX reference (same semantics as the PyTorch module, dropout=0).
    identity = x[:, jnp.array(skipindices)]
    identity = jnp.concatenate(
        [identity,
         jnp.zeros((B, out_features - len(skipindices)), jnp.float32)], axis=1)
    r = x
    for i, (w, b) in enumerate(zip(weights, biases)):
        r = r @ w.T + b
        if not (islast and i == nskiplayers - 1):
            r = jnp.where(r >= 0.0, r, _NEG_SLOPE * r)
    ref = r + identity

    assert out.shape == (B, out_features) and out.dtype == jnp.float32
    err = float(jnp.max(jnp.abs(out - ref)))
    assert jnp.allclose(out, ref, atol=1e-5, rtol=1e-4), f"max abs err {err}"
    print("KERNEL_OK")
</pallas_src>

<mosaic_0001>
module attributes {stable_mosaic.version = 11 : i64} {
  func.func @kernel(%arg0: memref<8x16xf32, #tpu.memory_space<vmem>>, %arg1: memref<168x128xf32, #tpu.memory_space<vmem>>, %arg2: memref<8x32xf32, #tpu.memory_space<vmem>>) attributes {dimension_semantics = [], scalar_prefetch = 0 : i64, scratch_operands = 0 : i64, tpu.core_type = #tpu.core_type<tc>} {
    %c0 = arith.constant 0 : index
    %c0_0 = arith.constant 0 : index
    %0 = vector.load %arg0[%c0, %c0_0] : memref<8x16xf32, #tpu.memory_space<vmem>>, vector<8x16xf32>
    %c144 = arith.constant 144 : index
    %c0_1 = arith.constant 0 : index
    %1 = vector.load %arg1[%c144, %c0_1] : memref<168x128xf32, #tpu.memory_space<vmem>>, vector<16x128xf32>
    %cst = arith.constant dense<0.000000e+00> : vector<8x128xf32>
    %2 = tpu.matmul %0, %1, %cst {dimension_numbers = #tpu.dot_dimension_numbers<[1], [0], [0], [1], [0, 0, 1, 1], [], []>} : vector<8x16xf32>, vector<16x128xf32>, vector<8x128xf32> -> vector<8x128xf32>
    %c0_2 = arith.constant 0 : index
    %c0_3 = arith.constant 0 : index
    %3 = vector.load %arg1[%c0_2, %c0_3] : memref<168x128xf32, #tpu.memory_space<vmem>>, vector<16x128xf32>
    %c160 = arith.constant 160 : index
    %c0_4 = arith.constant 0 : index
    %4 = vector.load %arg1[%c160, %c0_4] : memref<168x128xf32, #tpu.memory_space<vmem>>, vector<1x128xf32>
    %cst_5 = arith.constant dense<0.000000e+00> : vector<8x128xf32>
    %5 = tpu.matmul %0, %3, %cst_5 {dimension_numbers = #tpu.dot_dimension_numbers<[1], [0], [0], [1], [0, 0, 1, 1], [], []>} : vector<8x16xf32>, vector<16x128xf32>, vector<8x128xf32> -> vector<8x128xf32>
    %6 = vector.broadcast %4 : vector<1x128xf32> to vector<8x128xf32>
    %7 = arith.addf %5, %6 : vector<8x128xf32>
    %cst_6 = arith.constant 0.00999999977 : f32
    %8 = vector.broadcast %cst_6 : f32 to vector<8x128xf32>
    %9 = arith.mulf %8, %7 : vector<8x128xf32>
    %10 = arith.maximumf %7, %9 : vector<8x128xf32>
    %c16 = arith.constant 16 : index
    %c0_7 = arith.constant 0 : index
    %11 = vector.load %arg1[%c16, %c0_7] : memref<168x128xf32, #tpu.memory_space<vmem>>, vector<128x128xf32>
    %c161 = arith.constant 161 : index
    %c0_8 = arith.constant 0 : index
    %12 = vector.load %arg1[%c161, %c0_8] : memref<168x128xf32, #tpu.memory_space<vmem>>, vector<1x128xf32>
    %cst_9 = arith.constant dense<0.000000e+00> : vector<8x128xf32>
    %13 = tpu.matmul %10, %11, %cst_9 {dimension_numbers = #tpu.dot_dimension_numbers<[1], [0], [0], [1], [0, 0, 1, 1], [], []>} : vector<8x128xf32>, vector<128x128xf32>, vector<8x128xf32> -> vector<8x128xf32>
    %14 = vector.broadcast %12 : vector<1x128xf32> to vector<8x128xf32>
    %15 = arith.addf %13, %14 : vector<8x128xf32>
    %cst_10 = arith.constant 0.00999999977 : f32
    %16 = vector.broadcast %cst_10 : f32 to vector<8x128xf32>
    %17 = arith.mulf %16, %15 : vector<8x128xf32>
    %18 = arith.maximumf %15, %17 : vector<8x128xf32>
    %19 = arith.addf %18, %2 : vector<8x128xf32>
    %20 = vector.extract_strided_slice %19 {offsets = [0, 0], sizes = [8, 32], strides = [1, 1]} : vector<8x128xf32> to vector<8x32xf32>
    %c0_11 = arith.constant 0 : index
    %c0_12 = arith.constant 0 : index
    %21 = vector.load %arg2[%c0_11, %c0_12] : memref<8x32xf32, #tpu.memory_space<vmem>>, vector<8x32xf32>
    tpu.vector_store %arg2[%c0_11, %c0_12], %20 {strides = array<i32>} : memref<8x32xf32, #tpu.memory_space<vmem>>, vector<8x32xf32>,
    return
  }
}

</mosaic_0001>

<bundles_post_ra>
// kernel: forward.1
= control target key start
LH: loop header
LB: loop body
LE: loop exit
PB: predicated region body
PF: predicated region fallthrough
CT: control target
= control target key end

     0   :  { %7 = vsyncpa [#allocation3], 0  ;;  %s561_s0 = inlined_call_operand.hbm [shape: f32[8,16], index: 0, kind: input, shape index: {}]   ;;  %s562_s1 = inlined_call_operand.hbm [shape: f32[168,128], index: 1, kind: input, shape index: {}]   ;;  %s563_s2 = inlined_call_operand.hbm [shape: f32[8,32], index: 2, kind: output, shape index: {}]  }
   0x1   :  { %8 = vsyncpa [#allocation6], 0 }
   0x2   :  { %9 = vsyncpa [#allocation4], 0  ;;  %s492_s9 = smov [#allocation2]   ;;  %s493_s11 = smov [#allocation5]  }
   0x3   :  { %s16_s10 = sshll.u32 %s492_s9, 4  ;;  %s25_s12 = sshll.u32 %s493_s11, 4  ;;  %s17_s10 = int_to_ptr.vmem [resolvable:$true] %s16_s10  ;;  %s515_s12 = int_to_ptr.vmem [resolvable:$true] %s25_s12 }
   0x4   :  { %s420_s15 = scalar_lea.hbm %s561_s0, 128 }
   0x5   :  { %p421_p0 = scmp.ne.s32.totalorder %s561_s0, %s420_s15  ;;  %p424_p1 = scmp.lt.u32.totalorder %s420_s15, %s561_s0 }
   0x7   :  { %p426_p2 = pnand %p424_p1, %p421_p0 }
   0x9   :  { %429 = shalt.err (!%p426_p2)
}
   0xa   :  { %s430_s20 = scalar_lea.vmem %s17_s10, 128  ;;  %p435_p4 = scmp.lt.s32.totalorder %s17_s10, %s17_s10 }
   0xb   :  { %p431_p3 = scmp.ne.s32.totalorder %s17_s10, %s430_s20  ;;  %p436_p5 = scmp.lt.s32.totalorder %s430_s20, %s430_s20 }
   0xd   :  { %p437_p6 = por %p436_p5, %p435_p4 }
   0xf   :  { %p438_p7 = pnand %p437_p6, %p431_p3 }
  0x11   :  { %441 = shalt.err (!%p438_p7)
}
  0x12   :  { %19 = dma.hbm_to_vmem [thread:$0]  %s561_s0, 128, %s17_s10, [#allocation3]  }
  0x13   :  { %s442_s25 = scalar_lea.hbm %s562_s1, 2688 }
  0x14   :  { %p443_p8 = scmp.ne.s32.totalorder %s562_s1, %s442_s25  ;;  %p446_p9 = scmp.lt.u32.totalorder %s442_s25, %s562_s1 }
  0x16   :  { %p448_p10 = pnand %p446_p9, %p443_p8 }
  0x18   :  { %451 = shalt.err (!%p448_p10)
}
  0x19   :  { %s452_s30 = scalar_lea.vmem %s515_s12, 2688  ;;  %p457_p12 = scmp.lt.s32.totalorder %s515_s12, %s515_s12 }
  0x1a   :  { %p453_p11 = scmp.ne.s32.totalorder %s515_s12, %s452_s30  ;;  %p458_p13 = scmp.lt.s32.totalorder %s452_s30, %s452_s30 }
  0x1c   :  { %p459_p0 = por %p458_p13, %p457_p12 }
  0x1e   :  { %p460_p1 = pnand %p459_p0, %p453_p11 }
  0x20   :  { %463 = shalt.err (!%p460_p1)
}
  0x21   :  { %s494_s0 = smov 128   ;;  %s495_s3 = smov 8  }
  0x22   :  { %31 = dma.hbm_to_vmem [thread:$0]  %s562_s1, 2688, %s515_s12, [#allocation6], %s494_s0, %s494_s0, %s495_s3  }
  0x23   :  { %486 = dma.done.wait [#allocation3], 128  }
  0x24   :  { %487 = vsyncadd [#allocation3], 4294967168 }
  0x25   :  { %488 = dma.done.wait [#allocation6], 2688  }
  0x26   :  { %489 = vsyncadd [#allocation6], 4294964608  ;;  %v496_v0 = vmov 0.0|0.0   ;;  %vm497_vm0 = vmmov 0   ;;  %v498_v1 = vmov 0.0   ;;  %v39_v2 = vld [vmem:[#allocation5 + $0x90] sm:$0xff] }
  0x27   :  { %382 = vmatprep.subr.bf16.mxu1 %v496_v0  ;;  %337 = vmatprep.mubr.msk.f32.mxu1 %vm497_vm0, %v498_v1  ;;  %v40_v3 = vld [vmem:[#allocation5 + $0x98] sm:$0xff]  ;;  %v115_v5 = vld [vmem:[#allocation5] sm:$0xff]  ;;  %v116_v6 = vld [vmem:[#allocation5 + $0x8] sm:$0xff]  ;;  %vm41_vm1 = vcmask 130048   ;;  %s499_s1 = smov [#allocation7]   ;;  %vm288_vm2 = vcmask 261120  }
  0x28   :  { %388 = vmatprep.subr.bf16.mxu0 %v496_v0  ;;  %379 = vmatprep.mubr.msk.f32.mxu0 %vm497_vm0, %v498_v1  ;;  %v383_v4 = vpack.c.bf16 %v40_v3, %v39_v2  ;;  %v194_v7 = vld [vmem:[#allocation5 + $0x10] sm:$0xff]  ;;  %v195_v8 = vld [vmem:[#allocation5 + $0x18] sm:$0xff]  ;;  %v196_v9 = vld [vmem:[#allocation5 + $0x20] sm:$0xff]  ;;  %v386_v12 = vpack.c.bf16 %v116_v6, %v115_v5  ;;  %s296_s6 = sshll.u32 %s499_s1, 4  ;;  %s297_s6 = int_to_ptr.vmem [resolvable:$true] %s296_s6 }
  0x29   :  { %v197_v10 = vld [vmem:[#allocation5 + $0x28] sm:$0xff]  ;;  %v38_v11 = vld [vmem:[#allocation2] sm:$0xff]  ;;  %v389_v13 = vpack.c.bf16 %v195_v8, %v194_v7  ;;  %v198_v15 = vld [vmem:[#allocation5 + $0x30] sm:$0xff]  ;;  %s464_s7 = scalar_lea.vmem %s297_s6, 128  ;;  %p469_p3 = scmp.lt.s32.totalorder %s297_s6, %s297_s6 }
  0x2a   :  { %384 = vmatpush3.bf16.msra.mxu1 %v383_v4  ;;  %v392_v14 = vpack.c.bf16 %v197_v10, %v196_v9  ;;  %v199_v16 = vld [vmem:[#allocation5 + $0x38] sm:$0xff]  ;;  %v200_v18 = vld [vmem:[#allocation5 + $0x40] sm:$0xff]  ;;  %v201_v19 = vld [vmem:[#allocation5 + $0x48] sm:$0xff]  ;;  %p465_p2 = scmp.ne.s32.totalorder %s297_s6, %s464_s7  ;;  %p470_p4 = scmp.lt.s32.totalorder %s464_s7, %s464_s7 }
  0x2b   :  { %385 = vmatprep.subr.bf16.mxu1 %v496_v0  ;;  %390 = vmatpush3.bf16.msra.mxu0 %v389_v13  ;;  %v395_v17 = vpack.c.bf16 %v199_v16, %v198_v15  ;;  %v398_v20 = vpack.c.bf16 %v201_v19, %v200_v18  ;;  %v202_v21 = vld [vmem:[#allocation5 + $0x50] sm:$0xff]  ;;  %v203_v22 = vld [vmem:[#allocation5 + $0x58] sm:$0xff]  ;;  %v204_v24 = vld [vmem:[#allocation5 + $0x60] sm:$0xff] }
  0x2c   :  { %391 = vmatprep.subr.bf16.mxu0 %v496_v0  ;;  %v401_v23 = vpack.c.bf16 %v203_v22, %v202_v21  ;;  %v205_v25 = vld [vmem:[#allocation5 + $0x68] sm:$0xff]  ;;  %v206_v27 = vld [vmem:[#allocation5 + $0x70] sm:$0xff]  ;;  %v207_v28 = vld [vmem:[#allocation5 + $0x78] sm:$0xff]  ;;  %p471_p5 = por %p470_p4, %p469_p3 }
  0x2d   :  { %338 = vmatmul.mubr.msk.f32.vlgmr.msra.gmra.mrb[0].mxu1 %vm41_vm1, %v38_v11  ;;  %v404_v26 = vpack.c.bf16 %v205_v25, %v204_v24  ;;  %v407_v29 = vpack.c.bf16 %v207_v28, %v206_v27  ;;  %v208_v30 = vld [vmem:[#allocation5 + $0x80] sm:$0xff]  ;;  %v209_v31 = vld [vmem:[#allocation5 + $0x88] sm:$0xff] }
  0x2e   :  { %387 = vmatpush3.bf16.msra.mxu1 %v386_v12  ;;  %344 = vmatprep.mubr.msk.f32.mxu1 %vm497_vm0, %v498_v1  ;;  %v410_v32 = vpack.c.bf16 %v209_v31, %v208_v30  ;;  %v307_v35 = vld [vmem:[#allocation5 + $0xa0] ss:$0 sm:$0xff]  ;;  %v309_v41 = vld [vmem:[#allocation5 + $0xa1] ss:$0 sm:$0xff]  ;;  %p472_p6 = pnand %p471_p5, %p465_p2 }
  0x2f   :  { %393 = vmatpush3.bf16.msra.mxu0 %v392_v14 }
  0x30   :  { %394 = vmatprep.subr.bf16.mxu0 %v496_v0 }
  0x31   :  { %345 = vmatmul.mubr.msk.f32.vlgmr.msra.gmra.mrb[2].mxu1 %vm41_vm1, %v38_v11 }
  0x33   :  { %396 = vmatpush3.bf16.msra.mxu0 %v395_v17 }
  0x34   :  { %397 = vmatprep.subr.bf16.mxu0 %v496_v0 }
  0x37   :  { %399 = vmatpush3.bf16.msra.mxu0 %v398_v20 }
  0x38   :  { %400 = vmatprep.subr.bf16.mxu0 %v496_v0 }
  0x3b   :  { %402 = vmatpush3.bf16.msra.mxu0 %v401_v23 }
  0x3c   :  { %403 = vmatprep.subr.bf16.mxu0 %v496_v0 }
  0x3f   :  { %405 = vmatpush3.bf16.msra.mxu0 %v404_v26 }
  0x40   :  { %406 = vmatprep.subr.bf16.mxu0 %v496_v0 }
  0x43   :  { %408 = vmatpush3.bf16.msra.mxu0 %v407_v29 }
  0x44   :  { %409 = vmatprep.subr.bf16.mxu0 %v496_v0 }
  0x47   :  { %411 = vmatpush3.bf16.msra.mxu0 %v410_v32 }
 0x100   :  { %v111_v33 = vpop.f32.mrb[0].mxu1 }
 0x101   :  { %v339_v34 = vpop.f32.mrb[1].mxu1 }
 0x104   :  { %v188_v36 = vpop.f32.mrb[2].mxu1 }
 0x105   :  { %v189_v37 = vadd.f32 %v307_v35, %v188_v36  ;;  %v346_v38 = vpop.f32.mrb[3].mxu1 }
 0x107   :  { %v192_v39 = vmul.f32 0.01, %v189_v37 }
 0x109   :  { %v193_v40 = vmax.f32 %v189_v37, %v192_v39 }
 0x10b   :  { %380 = vmatmul.mubr.f32.vlgmr.msra.gmra.mrb[0].mxu0 %v193_v40 }
 0x1de   :  { %v281_v42 = vpop.f32.mrb[0].mxu0 }
 0x1df   :  { %v282_v43 = vadd.f32 %v309_v41, %v281_v42  ;;  %v381_v44 = vpop.f32.mrb[1].mxu0 }
 0x1e1   :  { %v285_v45 = vmul.f32 0.01, %v282_v43 }
 0x1e3   :  { %v286_v46 = vmax.f32 %v282_v43, %v285_v45 }
 0x1e5   :  { %v287_v47 = vadd.f32 %v286_v46, %v111_v33 }
 0x1e7   :  { %289 = vst.msk [vmem:[#allocation7] sm:$0xff] %vm288_vm2, %v287_v47 }
 0x1e8   :  { %475 = shalt.err (!%p472_p6)
}
 0x1e9   :  { %s476_s10 = scalar_lea.hbm %s563_s2, 128 }
 0x1ea   :  { %p477_p7 = scmp.ne.s32.totalorder %s563_s2, %s476_s10  ;;  %p480_p8 = scmp.lt.u32.totalorder %s476_s10, %s563_s2 }
 0x1ec   :  { %p482_p9 = pnand %p480_p8, %p477_p7 }
 0x1ee   :  { %485 = shalt.err (!%p482_p9)
}
 0x1ef   :  { %299 = dma.vmem_to_hbm [thread:$0]  %s297_s6, 128, %s563_s2, [#allocation4]  }
 0x1f0   :  { %490 = dma.done.wait [#allocation4], 128  }
 0x1f1   :  { %491 = vsyncadd [#allocation4], 4294967168 }
 0x1f2   :  { %303 = vsyncpa [#allocation3], 1 }
 0x1f3   :  { %304 = vsyncpa [#allocation6], 1 }
 0x1f4   :  { %305 = vsyncpa [#allocation4], 1 }

</bundles_post_ra>
